<compile_context>
chip_gen: v6e
topology: v6e:2x2x1
jax: 0.10.0
libtpu: 0.0.40
codegen_flags: <defaults>
</compile_context>

<pallas_src>
import functools

import jax
import jax.numpy as jnp
from jax.experimental import pallas as pl
from jax.experimental.pallas import tpu as pltpu


def _round_up(n, m):
    return ((n + m - 1) // m) * m


def _linear_kernel(x_ref, w_ref, b_ref, o_ref, acc_ref, *, compute_dtype):
    """One (tm, tn) output tile; K (=F) may be split across grid axis 2."""
    k = pl.program_id(2)

    @pl.when(k == 0)
    def _init():
        acc_ref[...] = jnp.zeros_like(acc_ref)

    # Cast the streamed x tile (and W if needed) in-kernel: no extra HBM pass.
    x = x_ref[...].astype(compute_dtype)
    w = w_ref[...].astype(compute_dtype)
    acc_ref[...] += jnp.dot(x, w, preferred_element_type=jnp.float32)

    @pl.when(k == pl.num_programs(2) - 1)
    def _finalize():
        # f32 bias add, then cast once on store.
        o_ref[...] = (acc_ref[...] + b_ref[...]).astype(o_ref.dtype)


def _vmem_budget():
    """Generation-aware (budget_for_tiles, vmem_limit_bytes)."""
    phys = None
    try:
        phys = getattr(pltpu.get_tpu_info(), "vmem_capacity_bytes", None)
    except Exception:
        phys = None
    if not phys:
        phys = 64 << 20  # conservative: v7x per-TensorCore VMEM
    # Leave headroom for Mosaic-internal scratch / semaphores.
    limit = max(24 << 20, min(phys - (24 << 20), 100 << 20))
    budget = int(limit * 0.85)
    return budget, int(limit)


def _plan_tiles(M, F, H, x_bytes, w_bytes, o_bytes, budget):
    """Pick (tm, tn, tk).  All pipelined blocks are counted double-buffered."""
    w_budget = int(budget * 0.4)

    # --- N (output-column) tiling: only if the whole W doesn't fit ----------
    if 2 * F * H * w_bytes <= w_budget or H <= 128:
        tn = H
    else:
        tn = max(128, ((w_budget // (2 * F * w_bytes)) // 128) * 128)
        tn = min(tn, _round_up(H, 128))

    # --- K (contraction) tiling: only if one column tile of W is still too big
    if 2 * F * tn * w_bytes <= w_budget or F <= 128:
        tk = F
    else:
        tk_cap = max(128, ((w_budget // (2 * tn * w_bytes)) // 128) * 128)
        tk = 0
        # tk must be a multiple of 128 (lane dim of the x block) and divide F
        # exactly: Pallas does not zero-fill ragged blocks, which would corrupt
        # a contraction-axis accumulation.
        for cand in range(min(tk_cap, (F // 128) * 128), 0, -128):
            if F % cand == 0:
                tk = cand
                break
        if tk == 0:
            # TODO(synk): huge F that is not a multiple of 128 — fall back to an
            # unsplit contraction (may exceed the VMEM budget for extreme F).
            tk = F

    # --- M (row) tile: whatever VMEM is left --------------------------------
    resident = 2 * tk * tn * w_bytes + 2 * tn * 4              # W + f32 bias (2-buffered)
    per_row = 2 * tk * x_bytes + 2 * tn * o_bytes + tn * 4     # x, out (2-buffered), acc
    tm = (budget - resident) // max(per_row, 1)
    tm = max(8, min(2048, (tm // 8) * 8))
    tm = min(tm, _round_up(M, 8))
    if M > 8:
        # Keep >=2 row steps so ("parallel", ...) can split rows across
        # both v7x TensorCores.
        tm = min(tm, _round_up(pl.cdiv(M, 2), 8))
    return int(tm), int(tn), int(tk)


def time_distributed_linear(x, w, b, *, compute_dtype=None, out_dtype=None):
    """x: (B, T, F), w: (F, H), b: (H,) -> (B, T, H).

    compute_dtype: optional MXU input dtype (e.g. jnp.bfloat16).  x stays in
    its HBM dtype and is cast per-tile inside the kernel; W is cast once in
    the wrapper (read-once, halves its resident footprint).  Accumulation and
    the bias add are always f32.
    """
    B, T, F = x.shape
    F_w, H = w.shape
    assert F_w == F
    M = B * T

    out_dtype = jnp.dtype(out_dtype) if out_dtype is not None else x.dtype
    cdt = jnp.dtype(compute_dtype) if compute_dtype is not None else jnp.dtype(x.dtype)

    # --- glue: collapse (batch, time); no padding, no extra HBM passes -------
    x2d = x.reshape(M, F)
    w2d = w if w.dtype == cdt else w.astype(cdt)
    b2d = b.reshape(1, H).astype(jnp.float32)

    budget, vmem_limit = _vmem_budget()
    tm, tn, tk = _plan_tiles(
        M, F, H,
        x2d.dtype.itemsize, w2d.dtype.itemsize, jnp.dtype(out_dtype).itemsize,
        budget)

    grid = (pl.cdiv(M, tm), pl.cdiv(H, tn), pl.cdiv(F, tk))

    cost = pl.CostEstimate(
        flops=2 * M * F * H,
        transcendentals=0,
        bytes_accessed=(M * F * x2d.dtype.itemsize
                        + F * H * w2d.dtype.itemsize
                        + H * 4
                        + M * H * jnp.dtype(out_dtype).itemsize),
    )

    kernel = functools.partial(_linear_kernel, compute_dtype=cdt)

    out2d = pl.pallas_call(
        kernel,
        out_shape=jax.ShapeDtypeStruct((M, H), out_dtype),
        grid_spec=pltpu.PrefetchScalarGridSpec(
            num_scalar_prefetch=0,
            grid=grid,
            in_specs=[
                pl.BlockSpec((tm, tk), lambda i, j, k: (i, k)),  # x rows stream
                pl.BlockSpec((tk, tn), lambda i, j, k: (k, j)),  # W (resident if 1x1 K/N grid)
                pl.BlockSpec((1, tn), lambda i, j, k: (0, j)),   # f32 bias
            ],
            out_specs=pl.BlockSpec((tm, tn), lambda i, j, k: (i, j)),
            scratch_shapes=[pltpu.VMEM((tm, tn), jnp.float32)],
        ),
        compiler_params=pltpu.CompilerParams(
            dimension_semantics=("parallel", "parallel", "arbitrary"),
            vmem_limit_bytes=vmem_limit,
        ),
        cost_estimate=cost,
    )(x2d, w2d, b2d)

    # --- glue: restore (batch, time) -----------------------------------------
    return out2d.reshape(B, T, H)


if __name__ == "__main__":
    # Small shapes implied by the forward: (batch, time, features).
    B, T, F, H = 2, 8, 32, 64

    key = jax.random.PRNGKey(0)
    kx, kw, kb = jax.random.split(key, 3)

    x = jax.random.normal(kx, (B, T, F), dtype=jnp.float32)
    # Deterministic synthetic "Linear" parameters.
    w = jax.random.normal(kw, (F, H), dtype=jnp.float32) * 0.05
    b = jax.random.normal(kb, (H,), dtype=jnp.float32) * 0.01

    # High-precision reference (same semantics as PyTorch TimeDistributed(Linear)).
    ref = (jnp.dot(x.reshape(B * T, F), w,
                   precision=jax.lax.Precision.HIGHEST) + b).reshape(B, T, H)

    out = jax.block_until_ready(time_distributed_linear(x, w, b))
    assert out.shape == (B, T, H)
    assert jnp.allclose(out, ref, atol=1e-2, rtol=1e-2)

    # bf16 MXU path (wrapper W cast + in-kernel x cast, f32 accumulation).
    out_bf16 = jax.block_until_ready(
        time_distributed_linear(x, w, b, compute_dtype=jnp.bfloat16))
    assert jnp.allclose(out_bf16, ref, atol=5e-2, rtol=5e-2)

    # Ragged case: M and H not multiples of 8 / 128 exercise the masked blocks.
    B2, T2, F2, H2 = 3, 5, 32, 48
    x2 = jax.random.normal(kx, (B2, T2, F2), dtype=jnp.float32)
    w2 = jax.random.normal(kw, (F2, H2), dtype=jnp.float32) * 0.05
    b2 = jax.random.normal(kb, (H2,), dtype=jnp.float32) * 0.01
    ref2 = (jnp.dot(x2.reshape(B2 * T2, F2), w2,
                    precision=jax.lax.Precision.HIGHEST) + b2).reshape(B2, T2, H2)
    out2 = jax.block_until_ready(time_distributed_linear(x2, w2, b2))
    assert out2.shape == (B2, T2, H2)
    assert jnp.allclose(out2, ref2, atol=1e-2, rtol=1e-2)

    print("KERNEL_OK")
</pallas_src>

<mosaic_0001>
module attributes {stable_mosaic.version = 11 : i64} {
  func.func @_linear_kernel(%arg0: i32, %arg1: i32, %arg2: i32, %arg3: memref<8x32xf32, #tpu.memory_space<vmem>>, %arg4: memref<32x64xf32, #tpu.memory_space<vmem>>, %arg5: memref<1x64xf32, #tpu.memory_space<vmem>>, %arg6: memref<8x64xf32, #tpu.memory_space<vmem>>, %arg7: memref<8x64xf32, #tpu.memory_space<vmem>>) attributes {dimension_semantics = [#tpu.dimension_semantics<parallel>, #tpu.dimension_semantics<parallel>, #tpu.dimension_semantics<arbitrary>], iteration_bounds = array<i64: 2, 1, 1>, scalar_prefetch = 0 : i64, scratch_operands = 1 : i64, tpu.core_type = #tpu.core_type<tc>, window_params = [{transform_indices = @transform_0, window_bounds = array<i64: 8, 32>}, {transform_indices = @transform_1, window_bounds = array<i64: 32, 64>}, {transform_indices = @transform_2, window_bounds = array<i64: 1, 64>}, {transform_indices = @transform_3, window_bounds = array<i64: 8, 64>}]} {
    %c0_i32 = arith.constant 0 : i32
    %0 = arith.cmpi eq, %arg2, %c0_i32 : i32
    %1 = arith.extui %0 : i1 to i32
    %c0_i32_0 = arith.constant 0 : i32
    %2 = arith.cmpi ne, %1, %c0_i32_0 : i32
    scf.if %2 {
      %cst_10 = arith.constant 0.000000e+00 : f32
      %12 = vector.broadcast %cst_10 : f32 to vector<8x64xf32>
      %c0_11 = arith.constant 0 : index
      %c0_12 = arith.constant 0 : index
      %13 = vector.load %arg7[%c0_11, %c0_12] : memref<8x64xf32, #tpu.memory_space<vmem>>, vector<8x64xf32>
      tpu.vector_store %arg7[%c0_11, %c0_12], %12 {strides = array<i32>} : memref<8x64xf32, #tpu.memory_space<vmem>>, vector<8x64xf32>,
    } else {
    }
    %c0 = arith.constant 0 : index
    %c0_1 = arith.constant 0 : index
    %3 = vector.load %arg3[%c0, %c0_1] : memref<8x32xf32, #tpu.memory_space<vmem>>, vector<8x32xf32>
    %c0_2 = arith.constant 0 : index
    %c0_3 = arith.constant 0 : index
    %4 = vector.load %arg4[%c0_2, %c0_3] : memref<32x64xf32, #tpu.memory_space<vmem>>, vector<32x64xf32>
    %c0_4 = arith.constant 0 : index
    %c0_5 = arith.constant 0 : index
    %5 = vector.load %arg7[%c0_4, %c0_5] : memref<8x64xf32, #tpu.memory_space<vmem>>, vector<8x64xf32>
    %cst = arith.constant dense<0.000000e+00> : vector<8x64xf32>
    %6 = tpu.matmul %3, %4, %cst {dimension_numbers = #tpu.dot_dimension_numbers<[1], [0], [0], [1], [0, 0, 1, 1], [], []>} : vector<8x32xf32>, vector<32x64xf32>, vector<8x64xf32> -> vector<8x64xf32>
    %7 = arith.addf %5, %6 : vector<8x64xf32>
    %c0_6 = arith.constant 0 : index
    %c0_7 = arith.constant 0 : index
    %8 = vector.load %arg7[%c0_6, %c0_7] : memref<8x64xf32, #tpu.memory_space<vmem>>, vector<8x64xf32>
    tpu.vector_store %arg7[%c0_6, %c0_7], %7 {strides = array<i32>} : memref<8x64xf32, #tpu.memory_space<vmem>>, vector<8x64xf32>,
    %c0_i32_8 = arith.constant 0 : i32
    %9 = arith.cmpi eq, %arg2, %c0_i32_8 : i32
    %10 = arith.extui %9 : i1 to i32
    %c0_i32_9 = arith.constant 0 : i32
    %11 = arith.cmpi ne, %10, %c0_i32_9 : i32
    scf.if %11 {
      %c0_10 = arith.constant 0 : index
      %c0_11 = arith.constant 0 : index
      %12 = vector.load %arg7[%c0_10, %c0_11] : memref<8x64xf32, #tpu.memory_space<vmem>>, vector<8x64xf32>
      %c0_12 = arith.constant 0 : index
      %c0_13 = arith.constant 0 : index
      %13 = vector.load %arg5[%c0_12, %c0_13] : memref<1x64xf32, #tpu.memory_space<vmem>>, vector<1x64xf32>
      %14 = vector.broadcast %13 : vector<1x64xf32> to vector<8x64xf32>
      %15 = arith.addf %12, %14 : vector<8x64xf32>
      %c0_14 = arith.constant 0 : index
      %c0_15 = arith.constant 0 : index
      %16 = vector.load %arg6[%c0_14, %c0_15] : memref<8x64xf32, #tpu.memory_space<vmem>>, vector<8x64xf32>
      tpu.vector_store %arg6[%c0_14, %c0_15], %15 {strides = array<i32>} : memref<8x64xf32, #tpu.memory_space<vmem>>, vector<8x64xf32>,
    } else {
    }
    return
  }
  func.func @transform_0(%arg0: i32, %arg1: i32, %arg2: i32) -> (i32, i32) {
    %c0_i32 = arith.constant 0 : i32
    return %arg0, %arg2 : i32, i32
  }
  func.func @transform_1(%arg0: i32, %arg1: i32, %arg2: i32) -> (i32, i32) {
    %c0_i32 = arith.constant 0 : i32
    return %arg2, %arg1 : i32, i32
  }
  func.func @transform_2(%arg0: i32, %arg1: i32, %arg2: i32) -> (i32, i32) {
    %c0_i32 = arith.constant 0 : i32
    %c0_i32_0 = arith.constant 0 : i32
    return %c0_i32, %arg1 : i32, i32
  }
  func.func @transform_3(%arg0: i32, %arg1: i32, %arg2: i32) -> (i32, i32) {
    %c0_i32 = arith.constant 0 : i32
    return %arg0, %arg1 : i32, i32
  }
}

</mosaic_0001>

<bundles_post_ra>
// kernel: tpu_custom_call.1
= control target key start
LH: loop header
LB: loop body
LE: loop exit
PB: predicated region body
PF: predicated region fallthrough
CT: control target
= control target key end

     0   :  { %8 = vsyncpa [#allocation4], 0  ;;  %s932_s0 = inlined_call_operand.hbm [shape: f32[16,32], index: 0, kind: input, shape index: {}]   ;;  %s933_s1 = inlined_call_operand.hbm [shape: f32[32,64], index: 1, kind: input, shape index: {}]   ;;  %s934_s2 = inlined_call_operand.vmem [shape: f32[1,64], index: 2, kind: input, shape index: {}]   ;;  %s935_s3 = inlined_call_operand.hbm [shape: f32[16,64], index: 3, kind: output, shape index: {}]  }
   0x1   :  { %10 = vsyncpa [#allocation4 + $0x1], 0 }
   0x2   :  { %11 = vsyncpa [#allocation7], 0 }
   0x3   :  { %12 = vsyncpa [#allocation5], 0 }
   0x4   :  { %14 = vsyncpa [#allocation5 + $0x1], 0  ;;  %s755_s12 = smov 0   ;;  %s757_s13 = smov 0  }
   0x5   :  { %s759_s14 = smov 0   ;;  %s761_s15 = smov 0  }
   0x6   :  { %s763_s16 = smov 0   ;;  %s765_s17 = smov 0  }
   0x7 LB: > { %s477_s18 = sadd.s32 4294967295, %s726_s17   ;;  %s478_s19 = sadd.s32 4294967294, %s726_s17   ;;  %s726_s17 = sphi %s765_s17, %s20_s17   ;;  %s722_s16 = sphi %s763_s16, %s953_s16   ;;  %s718_s15 = sphi %s761_s15, %s952_s15   ;;  %s714_s14 = sphi %s759_s14, %s951_s14   ;;  %s710_s13 = sphi %s757_s13, %s950_s13   ;;  %s706_s12 = sphi %s755_s12, %s949_s12  }
   0x8   : > { %p61_p0 = scmp.ne.s32.totalorder %s710_s13, %s706_s12  ;;  %p789_p1 = scmp.eq.s32.totalorder %s477_s18, 0 }
   0x9   : > { %p793_p2 = scmp.eq.s32.totalorder %s477_s18, 1  ;;  %p147_p3 = scmp.eq.s32.totalorder %s478_s19, 1 }
   0xa   : > { %p799_p4 = por %p789_p1, %p61_p0  ;;  %p479_p5 = scmp.ge.s32.totalorder %s726_s17, 1 }
   0xb   : > { %p804_p6 = por %p147_p3, %p61_p0  ;;  %p154_p7 = scmp.lt.s32.totalorder %s726_s17, 3 }
   0xc   : > { %s939_s22 = scalar_select %p799_p4, 1, 0 }
   0xd   : > { %s940_s23 = scalar_select %p804_p6, 1, 0 }
   0xe   : > { %p809_p8 = pnand %p479_p5, %p154_p7  ;;  %s728_s25 = smov [#allocation6]  }
   0xf   : > { %s170_s26 = sshll.u32 %s728_s25, 4  ;;  %s39_s28 = sadd.s32 1, %s722_s16  ;;  %s171_s26 = int_to_ptr.vmem [resolvable:$true] %s170_s26 }
  0x10   : > { %p519_p9 = pneg %p809_p8  ;;  %s599_s29 = scalar_lea.vmem %s171_s26, 512 }
  0x11   : > { %p600_p13 = scmp.ne.s32.totalorder %s171_s26, %s599_s29  ;;  %p607_p5 = scmp.lt.s32.totalorder %s171_s26, %s171_s26 }
  0x12   : > { %p818_p11 = pnand %p519_p9, %p789_p1  ;;  %p608_p7 = scmp.lt.s32.totalorder %s599_s29, %s599_s29 }
  0x14   : > { %p590_p12 = pneg %p818_p11  ;;  %p609_p6 = por %p608_p7, %p607_p5 }
  0x16   : > { %p602_p0 = pnand %p600_p13, %p590_p12 }
  0x18   : > { %p603_p3 = pneg %p602_p0 }
  0x1a   : > { %p610_p4 = pnand %p609_p6, %p603_p3 }
  0x1c   : > { %613 = shalt.err (!%p610_p4)
}
  0x1d   : > { %s729_s30 = smov 128   ;;  %s730_s4 = smov 8  }
  0x1e   : > { %522 = dma.hbm_to_vmem [thread:$0]  (!%p818_p11), %s933_s1, 512, %s171_s26, [#allocation7], %s729_s30, %s729_s30, %s730_s4  }
  0x1f   : > { %p41_p6 = scmp.ge.s32.totalorder %s39_s28, 2  ;;  %s48_s7 = sadd.s32 1, %s714_s14 }
  0x20   : > { %p55_p4 = scmp.ne.s32.totalorder %s714_s14, %s710_s13  ;;  %p56_p9 = scmp.eq.s32.totalorder %s726_s17, 0 }
  0x21   : > { %s955_s28 = smov (%p41_p6, %s39_s28), 0  ;;  %p532_p0 = scmp.lt.s32.totalorder %s726_s17, 2 }
  0x22   : > { %p836_p12 = por %p56_p9, %p55_p4  ;;  %p842_p13 = por %p793_p2, %p55_p4 }
  0x23   : > { %s43_s10 = ssub.s32 %s722_s16, %s955_s28  ;;  %s190_s11 = sand.u32 1, %s714_s14  }
  0x24   : > { %p46_p11 = scmp.eq.s32.totalorder %s43_s10, 0  ;;  %s483_s18 = sshll.u32 %s190_s11, 3 }
  0x25   : > { %s484_s25 = sshll.u32 %s722_s16, 7  ;;  %s194_s30 = scalar_lea.vmem [#allocation3], %s483_s18 }
  0x26   : > { %s851_s19 = scalar_select %p46_p11, %s714_s14, %s48_s7  }
  0x27   : > { %s200_s29 = scalar_lea.hbm %s932_s0, %s484_s25  ;;  %s202_s4 = sshll.u32 %s194_s30, 4  ;;  %s203_s4 = int_to_ptr.vmem [resolvable:$true] %s202_s4 }
  0x28   : > { %p859_p2 = pnand %p532_p0, %p836_p12  ;;  %s191_s5 = scalar_lea.sflag [#allocation4], %s190_s11 }
  0x29   : > { %s627_s6 = scalar_lea.vmem %s203_s4, 128  ;;  %s731_s7 = smov [#allocation3]  }
  0x2a   : > { %p616_p3 = pneg %p859_p2  ;;  %p628_p5 = scmp.ne.s32.totalorder %s203_s4, %s627_s6 }
  0x2b   : > { %s632_s10 = sshll.u32 %s731_s7, 4  ;;  %s633_s10 = int_to_ptr.vmem [resolvable:$false] %s632_s10 }
  0x2c   : > { %p630_p7 = pnand %p628_p5, %p616_p3  ;;  %s634_s25 = scalar_lea.vmem %s633_s10, 256 }
  0x2d   : > { %p635_p4 = scmp.lt.s32.totalorder %s203_s4, %s633_s10  ;;  %p636_p9 = scmp.lt.s32.totalorder %s634_s25, %s627_s6 }
  0x2e   : > { %p631_p6 = pneg %p630_p7 }
  0x2f   : > { %p637_p11 = por %p636_p9, %p635_p4 }
  0x31   : > { %p638_p10 = pnand %p637_p11, %p631_p6 }
  0x33   : > { %641 = shalt.err (!%p638_p10)
}
  0x34   : > { %526 = dma.hbm_to_vmem [thread:$0]  (!%p859_p2), %s200_s29, 128, %s203_s4, %s191_s5  }
  0x35   : > { %211 = sbr.rel (%p809_p8) target bundleno = 288 (0x120), region = 32  ;;  %s870_s8 = sand.u32 (!%p809_p8), 1, %s710_s13  }
  0x36   : > { %s486_s11 = sshll.u32 (!%p809_p8), %s870_s8, 3  ;;  %s214_s18 = scalar_lea.sflag (!%p809_p8), [#allocation4], %s870_s8 }
  0x37   : > { %s217_s26 = scalar_lea.vmem (!%p809_p8), [#allocation3], %s486_s11  ;;  %p946_p12 = scmp.ne.s32.totalorder (!%p809_p8), %s939_s22, 0 }
  0x3a   : > { %693 = dma.done.wait (%p946_p12), %s214_s18, 128  }
  0x3b   : > { %695 = vsyncadd (%p946_p12), %s214_s18, 4294967168 }
  0x3c   : > { %697 = dma.done.wait (%p789_p1), [#allocation7], 512  }
  0x3d   : > { %699 = vsyncadd (%p789_p1), [#allocation7], 4294966784  ;;  %vm255_vm0 = vcmask 523264   ;;  %v732_v0 = vmov 0.0   ;;  %vm733_vm1 = vmmov 0   ;;  %v261_v1 = vld [vmem:[#allocation6 + $0x18] sm:$0xff] }
  0x3e   : > { %500 = vmatprep.subr.mxu0 %v732_v0  ;;  %508 = vmatprep.mubr.msk.f32.mxu0 %vm733_vm1, %v732_v0  ;;  %256 = vst.msk [vmem:[#allocation2] sm:$0xff] %vm255_vm0, %v732_v0  ;;  %v260_v2 = vld [vmem:[#allocation6 + $0x10] sm:$0xff]  ;;  %v259_v3 = vld [vmem:[#allocation6 + $0x8] sm:$0xff]  ;;  %v258_v4 = vld [vmem:[#allocation6] sm:$0xff]  ;;  %vm263_vm2 = vcmask 261120   ;;  %s492_s24 = sshll.u32 %s718_s15, 7 }
  0x3f   : > { %501 = vmatpush3.msra.mxu0 %v261_v1  ;;  %v257_v5 = vld [vmem:[%s217_s26] sm:$0xff]  ;;  %v490_v10 = vld [vmem:[%s934_s2] ss:$0 sm:$0xff]  ;;  %s246_s27 = scalar_lea.vmem [#allocation8], %s486_s11  ;;  %s366_s21 = scalar_lea.hbm %s935_s3, %s492_s24 }
  0x40   : > { %502 = vmatprep.subr.mxu0 %v732_v0  ;;  %s368_s29 = sshll.u32 %s246_s27, 4  ;;  %s354_s5 = scalar_lea.sflag [#allocation5], %s870_s8  ;;  %s369_s29 = int_to_ptr.vmem [resolvable:$true] %s368_s29 }
  0x41   : > { %503 = vmatpush3.msra.mxu0 %v260_v2  ;;  %s642_s6 = scalar_lea.vmem %s369_s29, 128  ;;  %s734_s7 = smov [#allocation8]  }
  0x42   : > { %504 = vmatprep.subr.mxu0 %v732_v0  ;;  %p643_p1 = scmp.ne.s32.totalorder %s369_s29, %s642_s6  ;;  %s646_s15 = sshll.u32 %s734_s7, 4  ;;  %s647_s15 = int_to_ptr.vmem [resolvable:$false] %s646_s15 }
  0x43   : > { %505 = vmatpush3.msra.mxu0 %v259_v3  ;;  %s648_s10 = scalar_lea.vmem %s647_s15, 256  ;;  %p649_p0 = scmp.lt.s32.totalorder %s369_s29, %s647_s15 }
  0x44   : > { %506 = vmatprep.subr.mxu0 %v732_v0  ;;  %p644_p8 = pnand %p643_p1, %p842_p13  ;;  %p650_p2 = scmp.lt.s32.totalorder %s648_s10, %s642_s6 }
  0x45   : > { %507 = vmatpush3.msra.mxu0 %v258_v4  ;;  %v262_v6 = vld [vmem:[#allocation2] sm:$0xff] }
  0x46   : > { %509 = vmatmul.mubr.msk.f32.vlgmr.msra.gmra.mxu0 %vm263_vm2, %v257_v5  ;;  %p645_p10 = pneg %p644_p8  ;;  %p651_p3 = por %p650_p2, %p649_p0 }
  0x48   : > { %p652_p5 = pnand %p651_p3, %p645_p10 }
 0x106   : > { %v333_v7 = vpop.f32.mrf.mxu0 }
 0x107   : > { %v337_v8 = vadd.f32 %v333_v7, %v262_v6 }
 0x108   : > { %v510_v9 = vpop.f32.mrf.mxu0 }
 0x109   : > { %339 = vst.msk [vmem:[#allocation2] sm:$0xff] %vm255_vm0, %v337_v8 }
 0x110   : > { %v343_v11 = vld [vmem:[#allocation2] sm:$0xff] }
 0x111   : > { %v351_v12 = vadd.f32 %v490_v10, %v343_v11 }
 0x113   : > { %352 = vst.msk [vmem:[%s246_s27] sm:$0xff] %vm255_vm0, %v351_v12 }
 0x114   : > { %655 = shalt.err (!%p652_p5)
}
 0x115   : > { %s656_s25 = scalar_lea.hbm %s366_s21, 128  ;;  %s660_s18 = scalar_lea.hbm %s935_s3, 256 }
 0x116   : > { %p657_p7 = scmp.ne.s32.totalorder %s366_s21, %s656_s25  ;;  %p661_p9 = scmp.lt.s32.totalorder %s366_s21, %s935_s3 }
 0x117   : > { %p662_p11 = scmp.lt.s32.totalorder %s660_s18, %s656_s25 }
 0x118   : > { %p658_p6 = pnand %p657_p7, %p842_p13 }
 0x119   : > { %p663_p12 = por %p662_p11, %p661_p9 }
 0x11a   : > { %p659_p4 = pneg %p658_p6 }
 0x11c   : > { %p664_p1 = pnand %p663_p12, %p659_p4 }
 0x11e   : > { %667 = shalt.err (!%p664_p1)
}
 0x11f   : > { %517 = dma.vmem_to_hbm [thread:$0]  (%p842_p13), %s369_s29, 128, %s366_s21, %s354_s5  }
 0x120 PF: > { %s380_s22 = sand.u32 1, %s706_s12   ;;  %p947_p8 = scmp.ne.s32.totalorder %s940_s23, 0 }
 0x121   : > { %p948_p10 = scmp.ge.s32.totalorder %s726_s17, 2  ;;  %s381_s24 = scalar_lea.sflag [#allocation5], %s380_s22 }
 0x123   : > { %p528_p0 = pnand %p948_p10, %p947_p8 }
 0x125   : > { %p529_p2 = pneg %p528_p0 }
 0x127   : > { %701 = dma.done.wait (%p529_p2), %s381_s24, 128  }
 0x128   : > { %703 = vsyncadd (%p529_p2), %s381_s24, 4294967168  ;;  %s20_s17 = sadd.s32 1, %s726_s17   ;;  %s949_s12 = smov %s710_s13 }
 0x129   : > { %p17_p3 = scmp.ge.s32.totalorder %s20_s17, 4   ;;  %s950_s13 = smov %s714_s14 }
 0x12a   : > { %s951_s14 = smov %s851_s19  ;;  %s952_s15 = smov %s722_s16 }
 0x12b   : > { %s953_s16 = smov %s955_s28  ;;  %19 = sbr.rel (!%p17_p3) target bundleno = 7 (0x7), region = 93 }
 0x130   :  { %386 = vsyncpa [#allocation4], 1 }
 0x131   :  { %388 = vsyncpa [#allocation4 + $0x1], 1 }
 0x132   :  { %389 = vsyncpa [#allocation7], 1 }
 0x133   :  { %390 = vsyncpa [#allocation5], 1 }
 0x134   :  { %392 = vsyncpa [#allocation5 + $0x1], 1 }

</bundles_post_ra>
